<compile_context>
chip_gen: v7x
topology: tpu7x:2x2x1
jax: 0.10.0
libtpu: 0.0.40
codegen_flags: <defaults>
</compile_context>

<pallas_src>
import jax
import jax.numpy as jnp
from jax.experimental import pallas as pl
from jax.experimental.pallas import tpu as pltpu

LEAKY_SLOPE = 0.01  # PyTorch nn.LeakyReLU default negative_slope


def _conv_mm_kernel(p_ref, w_ref, b_ref, o_ref):
    # One MXU matmul per row-tile; bias + LeakyReLU fused on the VPU.
    acc = jnp.dot(p_ref[...], w_ref[...], preferred_element_type=jnp.float32)
    acc = acc + b_ref[...]                                   # broadcast [1, Np]
    o_ref[...] = jnp.where(acc > 0, acc, LEAKY_SLOPE * acc).astype(o_ref.dtype)


def _round_up(x, m):
    return (x + m - 1) // m * m


def cnn_halver_forward(image_nchw, weight, bias, *, stride=2, tile_m=256):
    """image_nchw: [N, C_in, H, W] f32.
    weight: [kH, kW, C_in, C_out] (PyTorch's conv.weight.permute(2, 3, 1, 0)).
    bias:   [C_out].
    Returns LeakyReLU(Conv2d(image)) as [N, C_out, H_out, W_out]."""
    N, C_in, H, W = image_nchw.shape
    kH, kW, wc_in, C_out = weight.shape
    assert wc_in == C_in
    pad = kH // 2 - 1
    H_out = (H + 2 * pad - kH) // stride + 1
    W_out = (W + 2 * pad - kW) // stride + 1

    # ---- wrapper-side layout plumbing: NCHW -> NHWC, zero-pad, im2col ----
    x = jnp.transpose(image_nchw, (0, 2, 3, 1))
    xp = jnp.pad(x, ((0, 0), (pad, pad), (pad, pad), (0, 0)))
    cols = []
    for kh in range(kH):
        for kw in range(kW):
            cols.append(jax.lax.slice(
                xp,
                (0, kh, kw, 0),
                (N, kh + stride * (H_out - 1) + 1, kw + stride * (W_out - 1) + 1, C_in),
                (1, stride, stride, 1)))
    # [N, H_out, W_out, kH*kW, C_in] -> [M, K], K-order = (kh, kw, ci)
    M = N * H_out * W_out
    Kc = kH * kW * C_in
    patches = jnp.stack(cols, axis=3).reshape(M, Kc)
    w2d = weight.reshape(Kc, C_out)
    b2d = bias.reshape(1, C_out)

    # ---- pad to lane/sublane-friendly shapes ----
    Kp = _round_up(Kc, 128)            # lane-dense MXU K
    Np = _round_up(C_out, 128)         # lane-dense output (unmasked stores)
    TM = min(tile_m, _round_up(M, 8))  # row tile (multiple of 8 sublanes)
    Mp = _round_up(M, TM)

    patches = jnp.pad(patches, ((0, Mp - M), (0, Kp - Kc)))
    w2d = jnp.pad(w2d, ((0, Kp - Kc), (0, Np - C_out)))
    b2d = jnp.pad(b2d, ((0, 0), (0, Np - C_out)))

    out = pl.pallas_call(
        _conv_mm_kernel,
        out_shape=jax.ShapeDtypeStruct((Mp, Np), jnp.float32),
        grid_spec=pltpu.PrefetchScalarGridSpec(
            num_scalar_prefetch=0,
            grid=(Mp // TM,),
            in_specs=[
                pl.BlockSpec((TM, Kp), lambda i: (i, 0)),   # patch row tile
                pl.BlockSpec((Kp, Np), lambda i: (0, 0)),   # resident weight
                pl.BlockSpec((1, Np), lambda i: (0, 0)),    # resident bias
            ],
            out_specs=pl.BlockSpec((TM, Np), lambda i: (i, 0)),
        ),
        compiler_params=pltpu.CompilerParams(
            dimension_semantics=("parallel",)),
    )(patches, w2d, b2d)

    out = out[:M, :C_out].reshape(N, H_out, W_out, C_out)
    return jnp.transpose(out, (0, 3, 1, 2))  # back to NCHW


def init_conv_params(key, in_channels, out_channels, kernel_size):
    """Mimics nn.Conv2d init: U(-1/sqrt(fan_in), 1/sqrt(fan_in)), fan_in=C_in*kH*kW.
    Weight stored as [kH, kW, C_in, C_out] (= torch weight.permute(2, 3, 1, 0))."""
    k_w, k_b = jax.random.split(key)
    fan_in = in_channels * kernel_size * kernel_size
    lim = 1.0 / float(jnp.sqrt(float(fan_in)))
    w = jax.random.uniform(
        k_w, (kernel_size, kernel_size, in_channels, out_channels),
        jnp.float32, -lim, lim)
    b = jax.random.uniform(k_b, (out_channels,), jnp.float32, -lim, lim)
    return w, b


if __name__ == "__main__":
    key = jax.random.PRNGKey(0)
    k_img, k_par = jax.random.split(key)

    N, C_IN, C_OUT, K, H, W = 2, 4, 8, 4, 16, 16   # kernel_size=4 -> pad=1, 16x16 -> 8x8
    image = jax.random.normal(k_img, (N, C_IN, H, W), jnp.float32)
    weight, bias = init_conv_params(k_par, C_IN, C_OUT, K)

    out = cnn_halver_forward(image, weight, bias)
    out = jax.block_until_ready(out)

    # Reference: XLA conv + LeakyReLU (same math, high precision).
    pad = K // 2 - 1
    x_nhwc = jnp.transpose(image, (0, 2, 3, 1))
    ref = jax.lax.conv_general_dilated(
        x_nhwc, weight, window_strides=(2, 2),
        padding=[(pad, pad), (pad, pad)],
        dimension_numbers=("NHWC", "HWIO", "NHWC"),
        precision=jax.lax.Precision.HIGHEST)
    ref = ref + bias
    ref = jnp.where(ref > 0, ref, LEAKY_SLOPE * ref)
    ref = jnp.transpose(ref, (0, 3, 1, 2))

    assert out.shape == (N, C_OUT, H // 2, W // 2)
    assert bool(jnp.allclose(out, ref, rtol=1e-3, atol=1e-3))
    print("KERNEL_OK")
</pallas_src>

<mosaic_0001>
module attributes {stable_mosaic.version = 11 : i64} {
  func.func @_conv_mm_kernel(%arg0: i32, %arg1: memref<128x128xf32, #tpu.memory_space<vmem>>, %arg2: memref<128x128xf32, #tpu.memory_space<vmem>>, %arg3: memref<1x128xf32, #tpu.memory_space<vmem>>, %arg4: memref<128x128xf32, #tpu.memory_space<vmem>>) attributes {dimension_semantics = [#tpu.dimension_semantics<parallel>], iteration_bounds = array<i64: 1>, scalar_prefetch = 0 : i64, scratch_operands = 0 : i64, tpu.core_type = #tpu.core_type<tc>, window_params = [{transform_indices = @transform_0, window_bounds = array<i64: 128, 128>}, {pipeline_mode = #tpu.pipeline_mode<synchronous>, transform_indices = @transform_1, window_bounds = array<i64: 128, 128>}, {pipeline_mode = #tpu.pipeline_mode<synchronous>, transform_indices = @transform_2, window_bounds = array<i64: 1, 128>}, {transform_indices = @transform_3, window_bounds = array<i64: 128, 128>}]} {
    %c0 = arith.constant 0 : index
    %c0_0 = arith.constant 0 : index
    %0 = vector.load %arg1[%c0, %c0_0] : memref<128x128xf32, #tpu.memory_space<vmem>>, vector<128x128xf32>
    %c0_1 = arith.constant 0 : index
    %c0_2 = arith.constant 0 : index
    %1 = vector.load %arg2[%c0_1, %c0_2] : memref<128x128xf32, #tpu.memory_space<vmem>>, vector<128x128xf32>
    %cst = arith.constant dense<0.000000e+00> : vector<128x128xf32>
    %2 = tpu.matmul %0, %1, %cst {dimension_numbers = #tpu.dot_dimension_numbers<[1], [0], [0], [1], [0, 0, 1, 1], [], []>} : vector<128x128xf32>, vector<128x128xf32>, vector<128x128xf32> -> vector<128x128xf32>
    %c0_3 = arith.constant 0 : index
    %c0_4 = arith.constant 0 : index
    %3 = vector.load %arg3[%c0_3, %c0_4] : memref<1x128xf32, #tpu.memory_space<vmem>>, vector<1x128xf32>
    %4 = vector.broadcast %3 : vector<1x128xf32> to vector<128x128xf32>
    %5 = arith.addf %2, %4 : vector<128x128xf32>
    %cst_5 = arith.constant 0.000000e+00 : f32
    %6 = vector.broadcast %cst_5 : f32 to vector<128x128xf32>
    %7 = arith.cmpf ogt, %5, %6 : vector<128x128xf32>
    %cst_6 = arith.constant 0.00999999977 : f32
    %8 = vector.broadcast %cst_6 : f32 to vector<128x128xf32>
    %9 = arith.mulf %8, %5 : vector<128x128xf32>
    %10 = arith.select %7, %5, %9 : vector<128x128xi1>, vector<128x128xf32>
    %c0_7 = arith.constant 0 : index
    %c0_8 = arith.constant 0 : index
    %11 = vector.load %arg4[%c0_7, %c0_8] : memref<128x128xf32, #tpu.memory_space<vmem>>, vector<128x128xf32>
    tpu.vector_store %arg4[%c0_7, %c0_8], %10 {strides = array<i32>} : memref<128x128xf32, #tpu.memory_space<vmem>>, vector<128x128xf32>,
    return
  }
  func.func @transform_0(%arg0: i32) -> (i32, i32) {
    %c0_i32 = arith.constant 0 : i32
    %c0_i32_0 = arith.constant 0 : i32
    return %arg0, %c0_i32 : i32, i32
  }
  func.func @transform_1(%arg0: i32) -> (i32, i32) {
    %c0_i32 = arith.constant 0 : i32
    %c0_i32_0 = arith.constant 0 : i32
    %c0_i32_1 = arith.constant 0 : i32
    return %c0_i32, %c0_i32_0 : i32, i32
  }
  func.func @transform_2(%arg0: i32) -> (i32, i32) {
    %c0_i32 = arith.constant 0 : i32
    %c0_i32_0 = arith.constant 0 : i32
    %c0_i32_1 = arith.constant 0 : i32
    return %c0_i32, %c0_i32_0 : i32, i32
  }
  func.func @transform_3(%arg0: i32) -> (i32, i32) {
    %c0_i32 = arith.constant 0 : i32
    %c0_i32_0 = arith.constant 0 : i32
    return %arg0, %c0_i32 : i32, i32
  }
}

</mosaic_0001>

<bundles_post_ra>
// kernel: tpu_custom_call.1
= control target key start
LH: loop header
LB: loop body
LE: loop exit
PB: predicated region body
PF: predicated region fallthrough
CT: control target
= control target key end

     0   :  { %8 = vsyncpa [#allocation3], 0  ;;  %s614_s0 = inlined_call_operand.hbm [shape: f32[128,128], index: 0, kind: input, shape index: {}]   ;;  %s615_s1 = inlined_call_operand.hbm [shape: f32[128,128], index: 1, kind: input, shape index: {}]   ;;  %s616_s2 = inlined_call_operand.vmem [shape: f32[1,128], index: 2, kind: input, shape index: {}]   ;;  %s617_s3 = inlined_call_operand.hbm [shape: f32[128,128], index: 3, kind: output, shape index: {}]  }
   0x1   :  { %9 = vsyncpa [#allocation6], 0 }
   0x2   :  { %10 = vsyncpa [#allocation4], 0  ;;  %s523_s12 = smov [#allocation2]   ;;  %s451_s16 = scalar_lea.hbm %s614_s0, 2048 }
   0x3   :  { %s16_s13 = sshll.u32 %s523_s12, 4  ;;  %p452_p0 = scmp.ne.s32.totalorder %s614_s0, %s451_s16  ;;  %s17_s13 = int_to_ptr.vmem [resolvable:$true] %s16_s13 }
   0x4   :  { %p455_p1 = scmp.lt.u32.totalorder %s451_s16, %s614_s0 }
   0x6   :  { %p457_p2 = pnand %p455_p1, %p452_p0 }
   0x8   :  { %460 = shalt.err (!%p457_p2)
}
   0x9   :  { %s461_s21 = scalar_lea.vmem %s17_s13, 2048  ;;  %p466_p4 = scmp.lt.s32.totalorder %s17_s13, %s17_s13 }
   0xa   :  { %p462_p3 = scmp.ne.s32.totalorder %s17_s13, %s461_s21  ;;  %p467_p5 = scmp.lt.s32.totalorder %s461_s21, %s461_s21 }
   0xc   :  { %p468_p6 = por %p467_p5, %p466_p4 }
   0xe   :  { %p469_p7 = pnand %p468_p6, %p462_p3 }
  0x10   :  { %472 = shalt.err (!%p469_p7)
}
  0x11   :  { %s524_s22 = smov 128   ;;  %s525_s23 = smov 8  }
  0x12   :  { %22 = dma.hbm_to_vmem [thread:$0]  %s614_s0, 2048, %s17_s13, [#allocation3], %s524_s22, %s524_s22, %s525_s23  }
  0x13   :  { %s526_s26 = smov [#allocation5]   ;;  %s473_s30 = scalar_lea.hbm %s615_s1, 2048 }
  0x14   :  { %s28_s27 = sshll.u32 %s526_s26, 4  ;;  %p474_p8 = scmp.ne.s32.totalorder %s615_s1, %s473_s30  ;;  %s29_s27 = int_to_ptr.vmem [resolvable:$true] %s28_s27 }
  0x15   :  { %p477_p9 = scmp.lt.u32.totalorder %s473_s30, %s615_s1 }
  0x17   :  { %p479_p10 = pnand %p477_p9, %p474_p8 }
  0x19   :  { %482 = shalt.err (!%p479_p10)
}
  0x1a   :  { %s483_s8 = scalar_lea.vmem %s29_s27, 2048  ;;  %p488_p12 = scmp.lt.s32.totalorder %s29_s27, %s29_s27 }
  0x1b   :  { %p484_p11 = scmp.ne.s32.totalorder %s29_s27, %s483_s8  ;;  %p489_p13 = scmp.lt.s32.totalorder %s483_s8, %s483_s8 }
  0x1d   :  { %p490_p0 = por %p489_p13, %p488_p12 }
  0x1f   :  { %p491_p1 = pnand %p490_p0, %p484_p11 }
  0x21   :  { %494 = shalt.err (!%p491_p1)
}
  0x22   :  { %34 = dma.hbm_to_vmem [thread:$0]  %s615_s1, 2048, %s29_s27, [#allocation6], %s524_s22, %s524_s22, %s525_s23  }
  0x23   :  { %517 = dma.done.wait [#allocation3], 2048  }
  0x24   :  { %518 = vsyncadd [#allocation3], 4294965248 }
  0x25   :  { %519 = dma.done.wait [#allocation6], 2048  }
  0x26   :  { %520 = vsyncadd [#allocation6], 4294965248  ;;  %v59_v0 = vld [vmem:[#allocation5] sm:$0xff]  ;;  %v60_v1 = vld [vmem:[#allocation5 + $0x8] sm:$0xff] }
  0x27   :  { %v61_v2 = vld [vmem:[#allocation5 + $0x10] sm:$0xff]  ;;  %v398_v3 = vpack.c.bf16 %v60_v1, %v59_v0  ;;  %v62_v4 = vld [vmem:[#allocation5 + $0x18] sm:$0xff]  ;;  %v63_v6 = vld [vmem:[#allocation5 + $0x20] sm:$0xff] }
  0x28   :  { %v402_v5 = vpack.c.bf16 %v62_v4, %v61_v2  ;;  %v64_v7 = vld [vmem:[#allocation5 + $0x28] sm:$0xff]  ;;  %v43_v9 = vld [vmem:[#allocation2] sm:$0xff]  ;;  %v65_v11 = vld [vmem:[#allocation5 + $0x30] sm:$0xff] }
  0x29   :  { %399 = vmatprep.subr.bf16.mxu0 %v398_v3  ;;  %430 = vmatprep.subr.bf16.mxu1 %v398_v3  ;;  %v406_v8 = vpack.c.bf16 %v64_v7, %v63_v6  ;;  %v51_v10 = vld [vmem:[#allocation2 + $0x40] sm:$0xff]  ;;  %v66_v12 = vld [vmem:[#allocation5 + $0x38] sm:$0xff]  ;;  %v68_v15 = vld [vmem:[#allocation5 + $0x48] sm:$0xff] }
  0x2a   :  { %401 = vmatpush3.bf16.msra.mxu0 %v398_v3  ;;  %438 = vmatpush3.bf16.msra.mxu1 %v398_v3  ;;  %v410_v13 = vpack.c.bf16 %v66_v12, %v65_v11  ;;  %v67_v14 = vld [vmem:[#allocation5 + $0x40] sm:$0xff]  ;;  %v69_v17 = vld [vmem:[#allocation5 + $0x50] sm:$0xff]  ;;  %v70_v18 = vld [vmem:[#allocation5 + $0x58] sm:$0xff] }
  0x2b   :  { %403 = vmatprep.subr.bf16.mxu0 %v402_v5  ;;  %431 = vmatprep.subr.bf16.mxu1 %v402_v5  ;;  %v414_v16 = vpack.c.bf16 %v68_v15, %v67_v14  ;;  %v418_v19 = vpack.c.bf16 %v70_v18, %v69_v17  ;;  %v71_v20 = vld [vmem:[#allocation5 + $0x60] sm:$0xff]  ;;  %v72_v21 = vld [vmem:[#allocation5 + $0x68] sm:$0xff]  ;;  %v73_v23 = vld [vmem:[#allocation5 + $0x70] sm:$0xff] }
  0x2c   :  { %374 = vmatprep.mubr.f32.mxu0 %v43_v9  ;;  %386 = vmatprep.mubr.f32.mxu1 %v51_v10  ;;  %v422_v22 = vpack.c.bf16 %v72_v21, %v71_v20  ;;  %v74_v24 = vld [vmem:[#allocation5 + $0x78] sm:$0xff]  ;;  %v44_v26 = vld [vmem:[#allocation2 + $0x8] sm:$0xff]  ;;  %v45_v28 = vld [vmem:[#allocation2 + $0x10] sm:$0xff] }
  0x2d   :  { %v426_v25 = vpack.c.bf16 %v74_v24, %v73_v23  ;;  %v52_v27 = vld [vmem:[#allocation2 + $0x48] sm:$0xff]  ;;  %v53_v29 = vld [vmem:[#allocation2 + $0x50] sm:$0xff]  ;;  %v46_v30 = vld [vmem:[#allocation2 + $0x18] sm:$0xff] }
  0x2e   :  { %405 = vmatpush3.bf16.msra.mxu0 %v402_v5  ;;  %439 = vmatpush3.bf16.msra.mxu1 %v402_v5  ;;  %v54_v31 = vld [vmem:[#allocation2 + $0x58] sm:$0xff]  ;;  %v47_v32 = vld [vmem:[#allocation2 + $0x20] sm:$0xff]  ;;  %v48_v34 = vld [vmem:[#allocation2 + $0x28] sm:$0xff] }
  0x2f   :  { %407 = vmatprep.subr.bf16.mxu0 %v406_v8  ;;  %432 = vmatprep.subr.bf16.mxu1 %v406_v8  ;;  %v55_v33 = vld [vmem:[#allocation2 + $0x60] sm:$0xff]  ;;  %v56_v35 = vld [vmem:[#allocation2 + $0x68] sm:$0xff]  ;;  %v49_v36 = vld [vmem:[#allocation2 + $0x30] sm:$0xff] }
  0x30   :  { %v57_v37 = vld [vmem:[#allocation2 + $0x70] sm:$0xff]  ;;  %v50_v38 = vld [vmem:[#allocation2 + $0x38] sm:$0xff]  ;;  %v581_v40 = vld [vmem:[%s616_s2] ss:$0 sm:$0xff]  ;;  %s527_s2 = smov [#allocation7]  }
  0x31   :  { %v58_v39 = vld [vmem:[#allocation2 + $0x78] sm:$0xff]  ;;  %s296_s11 = sshll.u32 %s527_s2, 4  ;;  %s297_s11 = int_to_ptr.vmem [resolvable:$true] %s296_s11 }
  0x32   :  { %409 = vmatpush3.bf16.msra.mxu0 %v406_v8  ;;  %440 = vmatpush3.bf16.msra.mxu1 %v406_v8  ;;  %s495_s12 = scalar_lea.vmem %s297_s11, 2048  ;;  %p500_p3 = scmp.lt.s32.totalorder %s297_s11, %s297_s11 }
  0x33   :  { %411 = vmatprep.subr.bf16.mxu0 %v410_v13  ;;  %433 = vmatprep.subr.bf16.mxu1 %v410_v13  ;;  %p496_p2 = scmp.ne.s32.totalorder %s297_s11, %s495_s12  ;;  %p501_p4 = scmp.lt.s32.totalorder %s495_s12, %s495_s12 }
  0x35   :  { %p502_p5 = por %p501_p4, %p500_p3 }
  0x36   :  { %413 = vmatpush3.bf16.msra.mxu0 %v410_v13  ;;  %441 = vmatpush3.bf16.msra.mxu1 %v410_v13 }
  0x37   :  { %415 = vmatprep.subr.bf16.mxu0 %v414_v16  ;;  %434 = vmatprep.subr.bf16.mxu1 %v414_v16  ;;  %p503_p6 = pnand %p502_p5, %p496_p2 }
  0x3a   :  { %417 = vmatpush3.bf16.msra.mxu0 %v414_v16  ;;  %442 = vmatpush3.bf16.msra.mxu1 %v414_v16 }
  0x3b   :  { %419 = vmatprep.subr.bf16.mxu0 %v418_v19  ;;  %435 = vmatprep.subr.bf16.mxu1 %v418_v19 }
  0x3e   :  { %421 = vmatpush3.bf16.msra.mxu0 %v418_v19  ;;  %443 = vmatpush3.bf16.msra.mxu1 %v418_v19 }
  0x3f   :  { %423 = vmatprep.subr.bf16.mxu0 %v422_v22  ;;  %436 = vmatprep.subr.bf16.mxu1 %v422_v22 }
  0x42   :  { %425 = vmatpush3.bf16.msra.mxu0 %v422_v22  ;;  %444 = vmatpush3.bf16.msra.mxu1 %v422_v22 }
  0x43   :  { %427 = vmatprep.subr.bf16.mxu0 %v426_v25  ;;  %437 = vmatprep.subr.bf16.mxu1 %v426_v25 }
  0x46   :  { %429 = vmatpush3.bf16.msra.mxu0 %v426_v25  ;;  %445 = vmatpush3.bf16.msra.mxu1 %v426_v25 }
  0x49   :  { %375 = vmatmul.mubr.f32.vlgmr.msra.gmra.mrb[0].mxu0 %v44_v26  ;;  %387 = vmatmul.mubr.f32.vlgmr.msra.gmra.mrb[0].mxu1 %v52_v27 }
  0x4a   :  { %377 = vmatprep.mubr.f32.mxu0 %v45_v28  ;;  %389 = vmatprep.mubr.f32.mxu1 %v53_v29 }
  0x4d   :  { %378 = vmatmul.mubr.f32.gmra.mrb[2].mxu0 %v46_v30  ;;  %390 = vmatmul.mubr.f32.gmra.mrb[2].mxu1 %v54_v31 }
  0x4e   :  { %380 = vmatprep.mubr.f32.mxu0 %v47_v32  ;;  %392 = vmatprep.mubr.f32.mxu1 %v55_v33 }
  0x51   :  { %381 = vmatmul.mubr.f32.gmra.mrb[4].mxu0 %v48_v34  ;;  %393 = vmatmul.mubr.f32.gmra.mrb[4].mxu1 %v56_v35 }
  0x52   :  { %383 = vmatprep.mubr.f32.mxu0 %v49_v36  ;;  %395 = vmatprep.mubr.f32.mxu1 %v57_v37 }
  0x55   :  { %384 = vmatmul.mubr.f32.gmra.mrb[6].mxu0 %v50_v38  ;;  %396 = vmatmul.mubr.f32.gmra.mrb[6].mxu1 %v58_v39 }
 0x11c   :  { %v376_v41 = vpop.f32.mrb[0].mxu0  ;;  %v388_v42 = vpop.f32.mrb[0].mxu1 }
 0x11d   :  { %v154_v43 = vadd.f32 %v376_v41, %v581_v40  ;;  %v194_v44 = vadd.f32 %v388_v42, %v581_v40  ;;  %v148_v45 = vpop.f32.mrb[1].mxu0  ;;  %v188_v46 = vpop.f32.mrb[1].mxu1 }
 0x11e   :  { %v149_v47 = vadd.f32 %v581_v40, %v148_v45  ;;  %v189_v48 = vadd.f32 %v581_v40, %v188_v46 }
 0x11f   :  { %vm228_vm0 = vcmp.gt.f32.partialorder %v154_v43, 0.0  ;;  %v244_v49 = vmul.f32 0.01, %v154_v43  ;;  %vm236_vm1 = vcmp.gt.f32.partialorder %v194_v44, 0.0  ;;  %v252_v50 = vmul.f32 0.01, %v194_v44 }
 0x120   :  { %vm227_vm2 = vcmp.gt.f32.partialorder %v149_v47, 0.0  ;;  %v243_v51 = vmul.f32 0.01, %v149_v47  ;;  %vm235_vm3 = vcmp.gt.f32.partialorder %v189_v48, 0.0  ;;  %v251_v52 = vmul.f32 0.01, %v189_v48 }
 0x121   :  { %v260_v53 = vsel %vm228_vm0, %v154_v43, %v244_v49  ;;  %v268_v54 = vsel %vm236_vm1, %v194_v44, %v252_v50  ;;  %v379_v55 = vpop.f32.mrb[2].mxu0  ;;  %v391_v56 = vpop.f32.mrb[2].mxu1 }
 0x122   :  { %276 = vst [vmem:[#allocation7 + $0x8] sm:$0xff] %v260_v53  ;;  %284 = vst [vmem:[#allocation7 + $0x48] sm:$0xff] %v268_v54  ;;  %v259_v57 = vsel %vm227_vm2, %v149_v47, %v243_v51  ;;  %v267_v58 = vsel %vm235_vm3, %v189_v48, %v251_v52  ;;  %v164_v59 = vadd.f32 %v379_v55, %v581_v40  ;;  %v158_v61 = vpop.f32.mrb[3].mxu0  ;;  %v198_v62 = vpop.f32.mrb[3].mxu1 }
 0x123   :  { %v204_v60 = vadd.f32 %v391_v56, %v581_v40  ;;  %275 = vst [vmem:[#allocation7] sm:$0xff] %v259_v57  ;;  %283 = vst [vmem:[#allocation7 + $0x40] sm:$0xff] %v267_v58  ;;  %v159_v63 = vadd.f32 %v581_v40, %v158_v61  ;;  %v199_v0 = vadd.f32 %v581_v40, %v198_v62 }
 0x124   :  { %vm230_vm4 = vcmp.gt.f32.partialorder %v164_v59, 0.0  ;;  %v246_v1 = vmul.f32 0.01, %v164_v59  ;;  %v382_v7 = vpop.f32.mrb[4].mxu0  ;;  %v394_v8 = vpop.f32.mrb[4].mxu1 }
 0x125   :  { %vm238_vm5 = vcmp.gt.f32.partialorder %v204_v60, 0.0  ;;  %v254_v2 = vmul.f32 0.01, %v204_v60  ;;  %vm229_vm6 = vcmp.gt.f32.partialorder %v159_v63, 0.0  ;;  %v245_v3 = vmul.f32 0.01, %v159_v63 }
 0x126   :  { %vm237_vm7 = vcmp.gt.f32.partialorder %v199_v0, 0.0  ;;  %v253_v4 = vmul.f32 0.01, %v199_v0  ;;  %v262_v5 = vsel %vm230_vm4, %v164_v59, %v246_v1  ;;  %v174_v11 = vadd.f32 %v382_v7, %v581_v40  ;;  %v168_v13 = vpop.f32.mrb[5].mxu0  ;;  %v208_v14 = vpop.f32.mrb[5].mxu1 }
 0x127   :  { %v270_v6 = vsel %vm238_vm5, %v204_v60, %v254_v2  ;;  %278 = vst [vmem:[#allocation7 + $0x18] sm:$0xff] %v262_v5  ;;  %v261_v9 = vsel %vm229_vm6, %v159_v63, %v245_v3  ;;  %v214_v12 = vadd.f32 %v394_v8, %v581_v40  ;;  %v169_v15 = vadd.f32 %v581_v40, %v168_v13 }
 0x128   :  { %286 = vst [vmem:[#allocation7 + $0x58] sm:$0xff] %v270_v6  ;;  %v269_v10 = vsel %vm237_vm7, %v199_v0, %v253_v4  ;;  %277 = vst [vmem:[#allocation7 + $0x10] sm:$0xff] %v261_v9  ;;  %v209_v16 = vadd.f32 %v581_v40, %v208_v14  ;;  %v385_v17 = vpop.f32.mrb[6].mxu0  ;;  %v397_v18 = vpop.f32.mrb[6].mxu1  ;;  %vm232_vm8 = vcmp.gt.f32.partialorder %v174_v11, 0.0 }
 0x129   :  { %285 = vst [vmem:[#allocation7 + $0x50] sm:$0xff] %v269_v10  ;;  %v248_v19 = vmul.f32 0.01, %v174_v11  ;;  %vm240_vm9 = vcmp.gt.f32.partialorder %v214_v12, 0.0  ;;  %v256_v20 = vmul.f32 0.01, %v214_v12  ;;  %v184_v25 = vadd.f32 %v385_v17, %v581_v40 }
 0x12a   :  { %vm231_vm10 = vcmp.gt.f32.partialorder %v169_v15, 0.0  ;;  %v247_v21 = vmul.f32 0.01, %v169_v15  ;;  %vm239_vm11 = vcmp.gt.f32.partialorder %v209_v16, 0.0  ;;  %v255_v22 = vmul.f32 0.01, %v209_v16 }
 0x12b   :  { %v264_v23 = vsel %vm232_vm8, %v174_v11, %v248_v19  ;;  %v272_v24 = vsel %vm240_vm9, %v214_v12, %v256_v20  ;;  %v224_v26 = vadd.f32 %v397_v18, %v581_v40  ;;  %v178_v27 = vpop.f32.mrb[7].mxu0  ;;  %v218_v28 = vpop.f32.mrb[7].mxu1  ;;  %vm234_vm12 = vcmp.gt.f32.partialorder %v184_v25, 0.0 }
 0x12c   :  { %280 = vst [vmem:[#allocation7 + $0x28] sm:$0xff] %v264_v23  ;;  %288 = vst [vmem:[#allocation7 + $0x68] sm:$0xff] %v272_v24  ;;  %v263_v29 = vsel %vm231_vm10, %v169_v15, %v247_v21  ;;  %v271_v30 = vsel %vm239_vm11, %v209_v16, %v255_v22  ;;  %v179_v31 = vadd.f32 %v581_v40, %v178_v27  ;;  %v250_v33 = vmul.f32 0.01, %v184_v25 }
 0x12d   :  { %v219_v32 = vadd.f32 %v581_v40, %v218_v28  ;;  %279 = vst [vmem:[#allocation7 + $0x20] sm:$0xff] %v263_v29  ;;  %287 = vst [vmem:[#allocation7 + $0x60] sm:$0xff] %v271_v30  ;;  %vm242_vm13 = vcmp.gt.f32.partialorder %v224_v26, 0.0  ;;  %v258_v34 = vmul.f32 0.01, %v224_v26 }
 0x12e   :  { %vm233_vm14 = vcmp.gt.f32.partialorder %v179_v31, 0.0  ;;  %v249_v35 = vmul.f32 0.01, %v179_v31  ;;  %v266_v37 = vsel %vm234_vm12, %v184_v25, %v250_v33 }
 0x12f   :  { %vm241_vm15 = vcmp.gt.f32.partialorder %v219_v32, 0.0  ;;  %v257_v36 = vmul.f32 0.01, %v219_v32  ;;  %v274_v38 = vsel %vm242_vm13, %v224_v26, %v258_v34  ;;  %282 = vst [vmem:[#allocation7 + $0x38] sm:$0xff] %v266_v37 }
 0x130   :  { %290 = vst [vmem:[#allocation7 + $0x78] sm:$0xff] %v274_v38  ;;  %v265_v39 = vsel %vm233_vm14, %v179_v31, %v249_v35 }
 0x131   :  { %v273_v41 = vsel %vm241_vm15, %v219_v32, %v257_v36  ;;  %281 = vst [vmem:[#allocation7 + $0x30] sm:$0xff] %v265_v39 }
 0x132   :  { %289 = vst [vmem:[#allocation7 + $0x70] sm:$0xff] %v273_v41 }
 0x133   :  { %506 = shalt.err (!%p503_p6)
}
 0x134   :  { %s507_s15 = scalar_lea.hbm %s617_s3, 2048 }
 0x135   :  { %p508_p7 = scmp.ne.s32.totalorder %s617_s3, %s507_s15  ;;  %p511_p8 = scmp.lt.u32.totalorder %s507_s15, %s617_s3 }
 0x137   :  { %p513_p9 = pnand %p511_p8, %p508_p7 }
 0x139   :  { %516 = shalt.err (!%p513_p9)
}
 0x13a   :  { %302 = dma.vmem_to_hbm [thread:$0]  %s297_s11, 2048, %s617_s3, [#allocation4], %s524_s22, %s524_s22, %s525_s23  }
 0x13b   :  { %521 = dma.done.wait [#allocation4], 2048  }
 0x13c   :  { %522 = vsyncadd [#allocation4], 4294965248 }
 0x13d   :  { %306 = vsyncpa [#allocation3], 1 }
 0x13e   :  { %307 = vsyncpa [#allocation6], 1 }
 0x13f   :  { %308 = vsyncpa [#allocation4], 1 }

</bundles_post_ra>
